<compile_context>
chip_gen: v7x
topology: tpu7x:2x2x1
jax: 0.10.0
libtpu: 0.0.40
codegen_flags: <defaults>
</compile_context>

<pallas_src>
import functools

import jax
import jax.numpy as jnp
import numpy as np
from jax.experimental import pallas as pl
from jax.experimental.pallas import tpu as pltpu

IN_EPS = 1e-3   # InstanceNorm2d eps
BN_EPS = 1e-5   # BatchNorm2d eps
_VMEM_FALLBACK = 64 << 20   # assume v7x-class (smallest) VMEM if the query fails


def _vmem_capacity_bytes():
    try:
        info = pltpu.get_tpu_info()
        for name in ("vmem_capacity_bytes", "vmem_size_bytes", "vmem_bytes"):
            v = getattr(info, name, None)
            if v:
                return int(v)
    except Exception:
        pass
    return _VMEM_FALLBACK


def _num_tensorcores():
    """TensorCores per chip (2 on v7x-class parts, 1 on v5e/v6e)."""
    try:
        dev = jax.devices()[0]
        n = getattr(dev, "num_cores", None)
        if n:
            return int(n)
        if "v7" in str(getattr(dev, "device_kind", "")).lower():
            return 2
    except Exception:
        pass
    return 1


def _choose_batch_tile(B, block_bytes_per_sample, temp_bytes_per_sample,
                       vmem_capacity, num_cores):
    """Largest batch tile whose whole per-grid-step VMEM footprint (double-buffered
    I/O blocks + in-kernel f32 temporaries) fits ~55% of this generation's VMEM."""
    step_budget = int(0.55 * vmem_capacity)
    per_sample = 2 * block_bytes_per_sample + temp_bytes_per_sample
    bt = max(1, min(B, step_budget // max(per_sample, 1)))
    # Keep >= num_cores grid steps so the "parallel" axis can shard across TCs (v7x).
    if num_cores > 1 and B > 1:
        bt = min(bt, max(1, -(-B // num_cores)))
    return bt


def _diff_unpool_kernel(x_up_ref, bn_scale_ref, bn_shift_ref, w_ref, cb_ref,
                        x_down_ref, out_ref, *, true_n):
    # Blocks (channel-major, lane axis = N):
    #   x_up_ref : (bt, C,  Np) bf16      x_down_ref: (bt, C2, P) bf16
    #   out_ref  : (bt, C2, Np)           bn_scale / bn_shift: (C, 1) f32
    #   w_ref    : (P, C) f32             cb_ref: (P, 1) f32
    inv_n = jnp.float32(1.0 / true_n)

    # Statistics in f32 (inputs stream as bf16).  Padded lane columns are zero, so
    # plain lane sums divided by the true N give exact InstanceNorm statistics.
    x = x_up_ref[...].astype(jnp.float32)                        # (bt, C, Np)
    mean = jnp.sum(x, axis=-1, keepdims=True) * inv_n            # (bt, C, 1)
    ex2 = jnp.sum(x * x, axis=-1, keepdims=True) * inv_n
    var = jnp.maximum(ex2 - mean * mean, 0.0)                    # clamp one-pass cancellation

    # InstanceNorm + folded eval-mode BatchNorm as a single per-channel FMA, + ReLU.
    scale_tot = bn_scale_ref[...][None] * jax.lax.rsqrt(var + IN_EPS)   # (bt, C, 1)
    shift_tot = bn_shift_ref[...][None] - mean * scale_tot
    h = jnp.maximum(x * scale_tot + shift_tot, 0.0).astype(jnp.bfloat16)  # (bt, C, Np)

    # 1x1 conv for the whole batch tile: batched MXU matmul, bf16 in / f32 acc.
    bt = h.shape[0]
    w_bf = jnp.broadcast_to(w_ref[...].astype(jnp.bfloat16)[None],
                            (bt,) + w_ref.shape)                 # (bt, P, C)
    embed = jnp.einsum("bpc,bcn->bpn", w_bf, h,
                       preferred_element_type=jnp.float32)
    embed = embed + cb_ref[...][None]                            # (bt, P, Np)

    # Softmax over the P output points (sublane axis); EUP approx reciprocal.
    m = jnp.max(embed, axis=1, keepdims=True)
    e = jnp.exp(embed - m)
    s = e * pl.reciprocal(jnp.sum(e, axis=1, keepdims=True), approx=True)

    # out[b, c2, n] = sum_p x_down[b, c2, p] * S[b, p, n]   (bf16 MXU, f32 acc).
    out = jnp.einsum("bcp,bpn->bcn", x_down_ref[...].astype(jnp.bfloat16),
                     s.astype(jnp.bfloat16), preferred_element_type=jnp.float32)
    out_ref[...] = out.astype(out_ref.dtype)


def diff_unpool_pallas(x_up_nchw, x_down_nchw, conv_w, conv_b,
                       bn_gamma, bn_beta, bn_rmean, bn_rvar,
                       out_dtype=jnp.bfloat16):
    """x_up_nchw: (B,C,N,1), x_down_nchw: (B,C2,P,1), conv_w: (P,C), conv_b: (P,).
    Returns (B, C2, N, 1) in `out_dtype` (bf16 by default: the kernel is memory-bound,
    so the output stream dominates HBM traffic)."""
    B, C, N, _ = x_up_nchw.shape
    _, C2, P, _ = x_down_nchw.shape
    assert conv_w.shape == (P, C)

    io_dtype = jnp.bfloat16
    # Layout-preserving reshapes only (drop trailing W=1 axis); bf16 streams.
    # (Ideally the producer already emits bf16 so these casts are no-ops.)
    x_up = x_up_nchw.reshape(B, C, N).astype(io_dtype)           # (B, C, N)
    x_dn = x_down_nchw.reshape(B, C2, P).astype(io_dtype)        # (B, C2, P)

    # Lane-dense N: pad the point axis to a multiple of 128 (zero pad; the kernel
    # divides lane sums by the true N, padded output columns are sliced off).
    n_pad = ((N + 127) // 128) * 128
    # TODO(synk): for N so large that one (C, n_pad) sample no longer fits VMEM, add
    # an "arbitrary" N-tile grid axis with a two-pass instance norm.

    # Fold eval-mode BatchNorm into per-channel scale/shift, shaped (C, 1) so they
    # broadcast along the lane (N) axis inside the kernel.
    scale_vec = bn_gamma.astype(jnp.float32) * jax.lax.rsqrt(
        bn_rvar.astype(jnp.float32) + BN_EPS)
    shift_vec = bn_beta.astype(jnp.float32) - bn_rmean.astype(jnp.float32) * scale_vec
    bn_scale = scale_vec.reshape(C, 1)
    bn_shift = shift_vec.reshape(C, 1)
    w = conv_w.astype(jnp.float32)                               # (P, C)
    cb = conv_b.reshape(P, 1).astype(jnp.float32)

    # Generation-aware batch-tile sizing (HBM-bound: biggest safe per-step blocks).
    out_bytes = np.dtype(out_dtype).itemsize
    block_bytes = 2 * (C * n_pad + C2 * P) + out_bytes * C2 * n_pad
    temp_bytes = (4 * (2 * C * n_pad + 2 * P * n_pad + C2 * n_pad)
                  + 2 * (C * n_pad + P * n_pad))
    vmem_cap = _vmem_capacity_bytes()
    num_cores = _num_tensorcores()
    bt = _choose_batch_tile(B, block_bytes, temp_bytes, vmem_cap, num_cores)

    b_pad = ((B + bt - 1) // bt) * bt                            # no "bt | B" requirement
    grid = (b_pad // bt,)

    need = (2 * bt * block_bytes + bt * temp_bytes
            + 4 * (2 * C + P * C + P) + (8 << 20))
    vmem_limit = int(min(0.85 * vmem_cap, max(32 << 20, need)))

    x_up_p = jnp.pad(x_up, ((0, b_pad - B), (0, 0), (0, n_pad - N)))
    x_dn_p = jnp.pad(x_dn, ((0, b_pad - B), (0, 0), (0, 0)))

    kernel = functools.partial(_diff_unpool_kernel, true_n=N)
    out = pl.pallas_call(
        kernel,
        out_shape=jax.ShapeDtypeStruct((b_pad, C2, n_pad), out_dtype),
        grid_spec=pltpu.PrefetchScalarGridSpec(
            num_scalar_prefetch=0,
            grid=grid,
            in_specs=[
                pl.BlockSpec((bt, C, n_pad), lambda b: (b, 0, 0)),   # x_up (channel-major)
                pl.BlockSpec((C, 1), lambda b: (0, 0)),              # fused BN scale
                pl.BlockSpec((C, 1), lambda b: (0, 0)),              # fused BN shift
                pl.BlockSpec((P, C), lambda b: (0, 0)),              # conv weight (P, C)
                pl.BlockSpec((P, 1), lambda b: (0, 0)),              # conv bias
                pl.BlockSpec((bt, C2, P), lambda b: (b, 0, 0)),      # x_down (channel-major)
            ],
            out_specs=pl.BlockSpec((bt, C2, n_pad), lambda b: (b, 0, 0)),
        ),
        compiler_params=pltpu.CompilerParams(
            dimension_semantics=("parallel",),
            vmem_limit_bytes=vmem_limit),
    )(x_up_p, bn_scale, bn_shift, w, cb, x_dn_p)

    # Drop batch / lane padding; restore the trailing W=1 axis (free reshapes).
    return out[:B, :, :N][..., None]


def diff_unpool_ref(x_up, x_down, conv_w, conv_b, gamma, beta, rmean, rvar):
    """Pure-JAX f32 reference mirroring the PyTorch forward (NCHW, eval-mode BN)."""
    mean = x_up.mean(axis=(2, 3), keepdims=True)
    var = ((x_up - mean) ** 2).mean(axis=(2, 3), keepdims=True)
    h = (x_up - mean) / jnp.sqrt(var + IN_EPS)
    h = ((h - rmean[None, :, None, None]) / jnp.sqrt(rvar[None, :, None, None] + BN_EPS)
         * gamma[None, :, None, None] + beta[None, :, None, None])
    h = jnp.maximum(h, 0.0)
    embed = jnp.einsum('bcnl,oc->bonl', h, conv_w) + conv_b[None, :, None, None]
    S = jax.nn.softmax(embed, axis=1)[..., 0]                    # (B, P, N)
    out = jnp.einsum('bcp,bpn->bcn', x_down[..., 0], S)[..., None]
    return out


if __name__ == "__main__":
    B, C, N = 2, 32, 16          # batch, in_channel, num points (x_up spatial)
    P, C2 = 8, 64                # output_points, x_down channels

    key = jax.random.PRNGKey(0)
    k1, k2, k3, k4 = jax.random.split(key, 4)

    # Inputs (PyTorch NCHW with W == 1).  Cast to bf16 producer-side so the kernel
    # streams bf16; the reference sees the same quantized values, so the comparison
    # isolates kernel-internal (bf16 MXU / approx-reciprocal / bf16 store) error.
    x_up = jax.random.normal(k1, (B, C, N, 1), dtype=jnp.float32).astype(jnp.bfloat16)
    x_down = jax.random.normal(k2, (B, C2, P, 1), dtype=jnp.float32).astype(jnp.bfloat16)

    # Deterministic parameter init (shapes from __init__).
    conv_w = 0.1 * jax.random.normal(k3, (P, C), dtype=jnp.float32)   # Conv2d(C->P, 1x1)
    conv_b = 0.1 * jax.random.normal(k4, (P,), dtype=jnp.float32)
    bn_gamma = jnp.ones((C,), jnp.float32)    # BatchNorm2d defaults (eval mode)
    bn_beta = jnp.zeros((C,), jnp.float32)
    bn_rmean = jnp.zeros((C,), jnp.float32)
    bn_rvar = jnp.ones((C,), jnp.float32)

    fn = jax.jit(diff_unpool_pallas)
    out = jax.block_until_ready(fn(x_up, x_down, conv_w, conv_b,
                                   bn_gamma, bn_beta, bn_rmean, bn_rvar))

    ref = diff_unpool_ref(x_up.astype(jnp.float32), x_down.astype(jnp.float32),
                          conv_w, conv_b, bn_gamma, bn_beta, bn_rmean, bn_rvar)
    assert out.shape == (B, C2, N, 1), out.shape
    # Tolerance accommodates bf16 streams, bf16 MXU operands, and the approximate
    # (EUP) softmax reciprocal.
    np.testing.assert_allclose(np.asarray(out, dtype=np.float32), np.asarray(ref),
                               rtol=2e-2, atol=3e-2)

    print("KERNEL_OK")
</pallas_src>

<mosaic_0001>
module attributes {stable_mosaic.version = 11 : i64} {
  func.func @_diff_unpool_kernel(%arg0: i32, %arg1: memref<2x32x128xbf16, #tpu.memory_space<vmem>>, %arg2: memref<32x1xf32, #tpu.memory_space<vmem>>, %arg3: memref<32x1xf32, #tpu.memory_space<vmem>>, %arg4: memref<8x32xf32, #tpu.memory_space<vmem>>, %arg5: memref<8x1xf32, #tpu.memory_space<vmem>>, %arg6: memref<2x64x8xbf16, #tpu.memory_space<vmem>>, %arg7: memref<2x64x128xbf16, #tpu.memory_space<vmem>>) attributes {dimension_semantics = [#tpu.dimension_semantics<parallel>], iteration_bounds = array<i64: 1>, scalar_prefetch = 0 : i64, scratch_operands = 0 : i64, tpu.core_type = #tpu.core_type<tc>, window_params = [{transform_indices = @transform_0, window_bounds = array<i64: 2, 32, 128>}, {pipeline_mode = #tpu.pipeline_mode<synchronous>, transform_indices = @transform_1, window_bounds = array<i64: 32, 1>}, {pipeline_mode = #tpu.pipeline_mode<synchronous>, transform_indices = @transform_2, window_bounds = array<i64: 32, 1>}, {pipeline_mode = #tpu.pipeline_mode<synchronous>, transform_indices = @transform_3, window_bounds = array<i64: 8, 32>}, {pipeline_mode = #tpu.pipeline_mode<synchronous>, transform_indices = @transform_4, window_bounds = array<i64: 8, 1>}, {transform_indices = @transform_5, window_bounds = array<i64: 2, 64, 8>}, {transform_indices = @transform_6, window_bounds = array<i64: 2, 64, 128>}]} {
    %c0 = arith.constant 0 : index
    %c0_0 = arith.constant 0 : index
    %c0_1 = arith.constant 0 : index
    %0 = vector.load %arg1[%c0, %c0_0, %c0_1] : memref<2x32x128xbf16, #tpu.memory_space<vmem>>, vector<2x32x128xbf16>
    %1 = arith.extf %0 : vector<2x32x128xbf16> to vector<2x32x128xf32>
    %cst = arith.constant dense<0.000000e+00> : vector<2x32xf32>
    %2 = vector.multi_reduction <add>, %1, %cst [2] : vector<2x32x128xf32> to vector<2x32xf32>
    %3 = vector.shape_cast %2 : vector<2x32xf32> to vector<2x32x1xf32>
    %cst_2 = arith.constant 6.250000e-02 : f32
    %4 = vector.broadcast %cst_2 : f32 to vector<2x32x1xf32>
    %5 = arith.mulf %3, %4 : vector<2x32x1xf32>
    %6 = arith.mulf %1, %1 : vector<2x32x128xf32>
    %cst_3 = arith.constant dense<0.000000e+00> : vector<2x32xf32>
    %7 = vector.multi_reduction <add>, %6, %cst_3 [2] : vector<2x32x128xf32> to vector<2x32xf32>
    %8 = vector.shape_cast %7 : vector<2x32xf32> to vector<2x32x1xf32>
    %cst_4 = arith.constant 6.250000e-02 : f32
    %9 = vector.broadcast %cst_4 : f32 to vector<2x32x1xf32>
    %10 = arith.mulf %8, %9 : vector<2x32x1xf32>
    %11 = arith.mulf %5, %5 : vector<2x32x1xf32>
    %12 = arith.subf %10, %11 : vector<2x32x1xf32>
    %cst_5 = arith.constant 0.000000e+00 : f32
    %13 = vector.broadcast %cst_5 : f32 to vector<2x32x1xf32>
    %14 = arith.maximumf %12, %13 : vector<2x32x1xf32>
    %c0_6 = arith.constant 0 : index
    %c0_7 = arith.constant 0 : index
    %15 = vector.load %arg2[%c0_6, %c0_7] : memref<32x1xf32, #tpu.memory_space<vmem>>, vector<32x1xf32>
    %16 = vector.shape_cast %15 : vector<32x1xf32> to vector<1x32x1xf32>
    %cst_8 = arith.constant 1.000000e-03 : f32
    %17 = vector.broadcast %cst_8 : f32 to vector<2x32x1xf32>
    %18 = arith.addf %14, %17 : vector<2x32x1xf32>
    %19 = math.rsqrt %18 : vector<2x32x1xf32>
    %20 = vector.broadcast %16 : vector<1x32x1xf32> to vector<2x32x1xf32>
    %21 = arith.mulf %20, %19 : vector<2x32x1xf32>
    %c0_9 = arith.constant 0 : index
    %c0_10 = arith.constant 0 : index
    %22 = vector.load %arg3[%c0_9, %c0_10] : memref<32x1xf32, #tpu.memory_space<vmem>>, vector<32x1xf32>
    %23 = vector.shape_cast %22 : vector<32x1xf32> to vector<1x32x1xf32>
    %24 = arith.mulf %5, %21 : vector<2x32x1xf32>
    %25 = vector.broadcast %23 : vector<1x32x1xf32> to vector<2x32x1xf32>
    %26 = arith.subf %25, %24 : vector<2x32x1xf32>
    %27 = vector.broadcast %21 : vector<2x32x1xf32> to vector<2x32x128xf32>
    %28 = arith.mulf %1, %27 : vector<2x32x128xf32>
    %29 = vector.broadcast %26 : vector<2x32x1xf32> to vector<2x32x128xf32>
    %30 = arith.addf %28, %29 : vector<2x32x128xf32>
    %cst_11 = arith.constant 0.000000e+00 : f32
    %31 = vector.broadcast %cst_11 : f32 to vector<2x32x128xf32>
    %32 = arith.maximumf %30, %31 : vector<2x32x128xf32>
    %33 = arith.truncf %32 : vector<2x32x128xf32> to vector<2x32x128xbf16>
    %c0_12 = arith.constant 0 : index
    %c0_13 = arith.constant 0 : index
    %34 = vector.load %arg4[%c0_12, %c0_13] : memref<8x32xf32, #tpu.memory_space<vmem>>, vector<8x32xf32>
    %35 = arith.truncf %34 : vector<8x32xf32> to vector<8x32xbf16>
    %36 = vector.shape_cast %35 : vector<8x32xbf16> to vector<1x8x32xbf16>
    %37 = vector.shape_cast %36 : vector<1x8x32xbf16> to vector<1x8x32xbf16>
    %38 = vector.broadcast %37 : vector<1x8x32xbf16> to vector<2x8x32xbf16>
    "tpu.trace_start"() <{level = 10 : i32, message = "bpc,bcn->bpn"}> : () -> ()
    %cst_14 = arith.constant dense<0.000000e+00> : vector<2x8x128xf32>
    %39 = tpu.matmul %38, %33, %cst_14 {dimension_numbers = #tpu.dot_dimension_numbers<[2], [1], [1], [2], [0, 0, 0, 1, 1, 2], [0], [0]>} : vector<2x8x32xbf16>, vector<2x32x128xbf16>, vector<2x8x128xf32> -> vector<2x8x128xf32>
    "tpu.trace_stop"() : () -> ()
    %c0_15 = arith.constant 0 : index
    %c0_16 = arith.constant 0 : index
    %40 = vector.load %arg5[%c0_15, %c0_16] : memref<8x1xf32, #tpu.memory_space<vmem>>, vector<8x1xf32>
    %41 = vector.shape_cast %40 : vector<8x1xf32> to vector<1x8x1xf32>
    %42 = vector.broadcast %41 : vector<1x8x1xf32> to vector<2x8x128xf32>
    %43 = arith.addf %39, %42 : vector<2x8x128xf32>
    %cst_17 = arith.constant dense<0xFF800000> : vector<2x128xf32>
    %44 = vector.multi_reduction <maximumf>, %43, %cst_17 [1] : vector<2x8x128xf32> to vector<2x128xf32>
    %45 = vector.shape_cast %44 : vector<2x128xf32> to vector<2x1x128xf32>
    %46 = vector.broadcast %45 : vector<2x1x128xf32> to vector<2x8x128xf32>
    %47 = arith.subf %43, %46 : vector<2x8x128xf32>
    %48 = math.exp %47 : vector<2x8x128xf32>
    %cst_18 = arith.constant dense<0.000000e+00> : vector<2x128xf32>
    %49 = vector.multi_reduction <add>, %48, %cst_18 [1] : vector<2x8x128xf32> to vector<2x128xf32>
    %50 = vector.shape_cast %49 : vector<2x128xf32> to vector<2x1x128xf32>
    %51 = tpu.reciprocal %50 {approx = true} : vector<2x1x128xf32> -> vector<2x1x128xf32>
    %52 = vector.broadcast %51 : vector<2x1x128xf32> to vector<2x8x128xf32>
    %53 = arith.mulf %48, %52 : vector<2x8x128xf32>
    %c0_19 = arith.constant 0 : index
    %c0_20 = arith.constant 0 : index
    %c0_21 = arith.constant 0 : index
    %54 = vector.load %arg6[%c0_19, %c0_20, %c0_21] : memref<2x64x8xbf16, #tpu.memory_space<vmem>>, vector<2x64x8xbf16>
    %55 = arith.truncf %53 : vector<2x8x128xf32> to vector<2x8x128xbf16>
    "tpu.trace_start"() <{level = 10 : i32, message = "bcp,bpn->bcn"}> : () -> ()
    %cst_22 = arith.constant dense<0.000000e+00> : vector<2x64x128xf32>
    %56 = tpu.matmul %54, %55, %cst_22 {dimension_numbers = #tpu.dot_dimension_numbers<[2], [1], [1], [2], [0, 0, 0, 1, 1, 2], [0], [0]>} : vector<2x64x8xbf16>, vector<2x8x128xbf16>, vector<2x64x128xf32> -> vector<2x64x128xf32>
    "tpu.trace_stop"() : () -> ()
    %57 = arith.truncf %56 : vector<2x64x128xf32> to vector<2x64x128xbf16>
    %c0_23 = arith.constant 0 : index
    %c0_24 = arith.constant 0 : index
    %c0_25 = arith.constant 0 : index
    %58 = vector.load %arg7[%c0_23, %c0_24, %c0_25] : memref<2x64x128xbf16, #tpu.memory_space<vmem>>, vector<2x64x128xbf16>
    tpu.vector_store %arg7[%c0_23, %c0_24, %c0_25], %57 {strides = array<i32>} : memref<2x64x128xbf16, #tpu.memory_space<vmem>>, vector<2x64x128xbf16>,
    return
  }
  func.func @transform_0(%arg0: i32) -> (i32, i32, i32) {
    %c0_i32 = arith.constant 0 : i32
    %c0_i32_0 = arith.constant 0 : i32
    %c0_i32_1 = arith.constant 0 : i32
    return %arg0, %c0_i32, %c0_i32_0 : i32, i32, i32
  }
  func.func @transform_1(%arg0: i32) -> (i32, i32) {
    %c0_i32 = arith.constant 0 : i32
    %c0_i32_0 = arith.constant 0 : i32
    %c0_i32_1 = arith.constant 0 : i32
    return %c0_i32, %c0_i32_0 : i32, i32
  }
  func.func @transform_2(%arg0: i32) -> (i32, i32) {
    %c0_i32 = arith.constant 0 : i32
    %c0_i32_0 = arith.constant 0 : i32
    %c0_i32_1 = arith.constant 0 : i32
    return %c0_i32, %c0_i32_0 : i32, i32
  }
  func.func @transform_3(%arg0: i32) -> (i32, i32) {
    %c0_i32 = arith.constant 0 : i32
    %c0_i32_0 = arith.constant 0 : i32
    %c0_i32_1 = arith.constant 0 : i32
    return %c0_i32, %c0_i32_0 : i32, i32
  }
  func.func @transform_4(%arg0: i32) -> (i32, i32) {
    %c0_i32 = arith.constant 0 : i32
    %c0_i32_0 = arith.constant 0 : i32
    %c0_i32_1 = arith.constant 0 : i32
    return %c0_i32, %c0_i32_0 : i32, i32
  }
  func.func @transform_5(%arg0: i32) -> (i32, i32, i32) {
    %c0_i32 = arith.constant 0 : i32
    %c0_i32_0 = arith.constant 0 : i32
    %c0_i32_1 = arith.constant 0 : i32
    return %arg0, %c0_i32, %c0_i32_0 : i32, i32, i32
  }
  func.func @transform_6(%arg0: i32) -> (i32, i32, i32) {
    %c0_i32 = arith.constant 0 : i32
    %c0_i32_0 = arith.constant 0 : i32
    %c0_i32_1 = arith.constant 0 : i32
    return %arg0, %c0_i32, %c0_i32_0 : i32, i32, i32
  }
}

</mosaic_0001>

<bundles_post_ra>
// kernel: diff_unpool_pallas.1
= control target key start
LH: loop header
LB: loop body
LE: loop exit
PB: predicated region body
PF: predicated region fallthrough
CT: control target
= control target key end

     0   :  { %v913_v20 = vmov 0   ;;  %vm915_vm0 = vmmov 0   ;;  %vm284_vm1 = vcmask 261120   ;;  %vm440_vm2 = vcmask 64512   ;;  %s1137_s0 = inlined_call_operand.vmem [shape: bf16[2,32,128], index: 0, kind: input, shape index: {}]   ;;  %s1138_s1 = inlined_call_operand.vmem [shape: f32[32,1], index: 1, kind: input, shape index: {}]   ;;  %s1139_s2 = inlined_call_operand.vmem [shape: f32[32,1], index: 2, kind: input, shape index: {}]   ;;  %s1140_s4 = inlined_call_operand.vmem [shape: f32[8,1], index: 4, kind: input, shape index: {}]   ;;  %s1141_s3 = inlined_call_operand.vmem [shape: f32[8,32], index: 3, kind: input, shape index: {}]   ;;  %s1142_s5 = inlined_call_operand.vmem [shape: bf16[2,64,8], index: 5, kind: input, shape index: {}]   ;;  %s1143_s6 = inlined_call_operand.vmem [shape: bf16[2,64,128], index: 6, kind: output, shape index: {}]  }
   0x1   :  { %v813_v0 = vld [vmem:[%s1137_s0 + $0x10] sm:$0xff]   ;;  %v757_v1 = vld [vmem:[%s1137_s0] sm:$0xff]   ;;  %v812_v10 = vld [vmem:[%s1137_s0 + $0x8] sm:$0xff]   ;;  %880 = vset.pattern.permute.xlu1 %v913_v20  ;;  %879 = vset.pattern.permute.xlu0 %v913_v20  ;;  %vm453_vm3 = vcmask 1043456  }
   0x2   :  { %v957_v2 = vunpack.c.l.bf16 %v813_v0  ;;  %v959_v3 = vunpack.c.l.bf16 %v757_v1  ;;  %v963_v4 = vunpack.c.h.bf16 %v813_v0  ;;  %v965_v5 = vunpack.c.h.bf16 %v757_v1  ;;  %v814_v13 = vld [vmem:[%s1137_s0 + $0x18] sm:$0xff]  }
   0x3   :  { %v980_v11 = vunpack.c.h.bf16 %v812_v10  ;;  %v982_v12 = vunpack.c.l.bf16 %v812_v10  ;;  %v989_v14 = vunpack.c.h.bf16 %v814_v13  ;;  %v991_v15 = vunpack.c.l.bf16 %v814_v13 }
   0x4   :  { %48 = vadd.xlane.f32.xlu1 %v957_v2  ;;  %40 = vadd.xlane.f32.xlu0 %v959_v3  ;;  %v65_v6 = vmul.f32 %v965_v5, %v965_v5  ;;  %v64_v7 = vmul.f32 %v959_v3, %v959_v3  ;;  %v69_v8 = vmul.f32 %v963_v4, %v963_v4 }
   0x5   :  { %v68_v9 = vmul.f32 %v957_v2, %v957_v2  ;;  %v67_v16 = vmul.f32 %v980_v11, %v980_v11  ;;  %v66_v17 = vmul.f32 %v982_v12, %v982_v12  ;;  %v71_v18 = vmul.f32 %v989_v14, %v989_v14 }
   0x6   :  { %v70_v19 = vmul.f32 %v991_v15, %v991_v15 }
   0x8   :  { %50 = vadd.xlane.f32.xlu1 %v963_v4  ;;  %42 = vadd.xlane.f32.xlu0 %v965_v5 }
   0xc   :  { %74 = vadd.xlane.f32.xlu1 %v65_v6  ;;  %72 = vadd.xlane.f32.xlu0 %v64_v7  ;;  %v121_v7 = vld [vmem:[%s1138_s1 + $0x8] sm:$0xff] }
  0x10   :  { %82 = vadd.xlane.f32.xlu1 %v69_v8  ;;  %80 = vadd.xlane.f32.xlu0 %v68_v9 }
  0x14   :  { %46 = vadd.xlane.f32.xlu1 %v980_v11  ;;  %44 = vadd.xlane.f32.xlu0 %v982_v12 }
  0x18   :  { %54 = vadd.xlane.f32.xlu1 %v989_v14  ;;  %52 = vadd.xlane.f32.xlu0 %v991_v15 }
  0x1c   :  { %78 = vadd.xlane.f32.xlu1 %v67_v16  ;;  %76 = vadd.xlane.f32.xlu0 %v66_v17  ;;  %v120_v16 = vld [vmem:[%s1138_s1] sm:$0xff] }
  0x20   :  { %86 = vadd.xlane.f32.xlu1 %v71_v18  ;;  %84 = vadd.xlane.f32.xlu0 %v70_v19 }
  0x91   :  { %v49_v21 = vpop.xlane.xlu1 %48  ;;  %v41_v22 = vpop.xlane.xlu0 %40 }
  0x92   :  { %v1003_v25 = vmul.f32 0.0625, %v41_v22  ;;  %v1007_v27 = vmul.f32 0.0625, %v49_v21 }
  0x94   :  { %v96_v31 = vmul.f32 %v1003_v25, %v1003_v25  ;;  %v100_v37 = vmul.f32 %v1007_v27, %v1007_v27 }
  0x95   :  { %v51_v23 = vpop.xlane.xlu1 %50  ;;  %v43_v24 = vpop.xlane.xlu0 %42 }
  0x96   :  { %v1005_v26 = vmul.f32 0.0625, %v43_v24  ;;  %v1009_v28 = vmul.f32 0.0625, %v51_v23 }
  0x98   :  { %v97_v32 = vmul.f32 %v1005_v26, %v1005_v26  ;;  %v101_v38 = vmul.f32 %v1009_v28, %v1009_v28 }
  0x99   :  { %v75_v29 = vpop.xlane.xlu1 %74  ;;  %v73_v30 = vpop.xlane.xlu0 %72 }
  0x9a   :  { %v89_v33 = vmul.f32 0.0625, %v75_v29  ;;  %v88_v34 = vmul.f32 0.0625, %v73_v30 }
  0x9c   :  { %v105_v35 = vsub.f32 %v89_v33, %v97_v32  ;;  %v104_v36 = vsub.f32 %v88_v34, %v96_v31 }
  0x9d   :  { %v83_v39 = vpop.xlane.xlu1 %82  ;;  %v81_v40 = vpop.xlane.xlu0 %80 }
  0x9e   :  { %v113_v41 = vmax.f32 %v105_v35, 0.0  ;;  %v112_v42 = vmax.f32 %v104_v36, 0.0  ;;  %v93_v43 = vmul.f32 0.0625, %v83_v39  ;;  %v92_v44 = vmul.f32 0.0625, %v81_v40 }
  0xa0   :  { %v125_v45 = vadd.f32 0.001, %v113_v41  ;;  %v124_v46 = vadd.f32 0.001, %v112_v42  ;;  %v109_v47 = vsub.f32 %v93_v43, %v101_v38  ;;  %v108_v48 = vsub.f32 %v92_v44, %v100_v37  ;;  %v123_v43 = vld [vmem:[%s1138_s1 + $0x18] sm:$0xff]  ;;  %v122_v44 = vld [vmem:[%s1138_s1 + $0x10] sm:$0xff] }
  0xa1   :  { %v47_v49 = vpop.xlane.xlu1 %46  ;;  %v45_v50 = vpop.xlane.xlu0 %44 }
  0xa2   :  { %889 = vrsqrt.f32 %v125_v45  ;;  %v117_v51 = vmax.f32 %v109_v47, 0.0  ;;  %v116_v52 = vmax.f32 %v108_v48, 0.0  ;;  %v1019_v54 = vmul.f32 0.0625, %v47_v49 }
  0xa3   :  { %891 = vrsqrt.f32 %v124_v46  ;;  %v1021_v58 = vmul.f32 0.0625, %v45_v50 }
  0xa4   :  { %v128_v53 = vadd.f32 0.001, %v116_v52  ;;  %v129_v55 = vadd.f32 0.001, %v117_v51  ;;  %v99_v59 = vmul.f32 %v1019_v54, %v1019_v54 }
  0xa5   :  { %v55_v56 = vpop.xlane.xlu1 %54  ;;  %v53_v57 = vpop.xlane.xlu0 %52  ;;  %v98_v0 = vmul.f32 %v1021_v58, %v1021_v58 }
  0xa6   :  { %893 = vrsqrt.f32 %v128_v53  ;;  %v1025_v60 = vmul.f32 0.0625, %v55_v56  ;;  %v1027_v61 = vmul.f32 0.0625, %v53_v57  ;;  %v148_v57 = vld [vmem:[%s1139_s2] sm:$0xff] }
  0xa7   :  { %895 = vrsqrt.f32 %v129_v55  ;;  %v151_v55 = vld [vmem:[%s1139_s2 + $0x18] sm:$0xff] }
  0xa8   :  { %v103_v9 = vmul.f32 %v1025_v60, %v1025_v60  ;;  %v102_v18 = vmul.f32 %v1027_v61, %v1027_v61 }
  0xa9   :  { %v79_v62 = vpop.xlane.xlu1 %78  ;;  %v77_v63 = vpop.xlane.xlu0 %76 }
  0xaa   :  { %v91_v1 = vmul.f32 0.0625, %v79_v62  ;;  %v90_v6 = vmul.f32 0.0625, %v77_v63 }
  0xac   :  { %v890_v8 = vpop.eup %889  ;;  %v107_v10 = vsub.f32 %v91_v1, %v99_v59  ;;  %v106_v13 = vsub.f32 %v90_v6, %v98_v0 }
  0xad   :  { %v892_v17 = vpop.eup %891  ;;  %v87_v19 = vpop.xlane.xlu1 %86  ;;  %v141_v21 = vmul.f32 %v890_v8, %v121_v7 }
  0xae   :  { %v85_v20 = vpop.xlane.xlu0 %84  ;;  %v115_v22 = vmax.f32 %v107_v10, 0.0  ;;  %v114_v23 = vmax.f32 %v106_v13, 0.0  ;;  %v95_v24 = vmul.f32 0.0625, %v87_v19  ;;  %v140_v30 = vmul.f32 %v892_v17, %v120_v16  ;;  %v150_v10 = vld [vmem:[%s1139_s2 + $0x10] sm:$0xff] }
  0xaf   :  { %v94_v29 = vmul.f32 0.0625, %v85_v20  ;;  %175 = vperm.xlu1 %880, %v141_v21   ;;  %v153_v0 = vmul.f32 %v141_v21, %v1005_v26  ;;  %v914_v26 = vmov 0.0  }
  0xb0   :  { %v127_v31 = vadd.f32 0.001, %v115_v22  ;;  %v126_v32 = vadd.f32 0.001, %v114_v23  ;;  %v111_v33 = vsub.f32 %v95_v24, %v103_v9  ;;  %v894_v35 = vpop.eup %893  ;;  %170 = vperm.xlu0 %879, %v140_v30   ;;  %v152_v56 = vmul.f32 %v140_v30, %v1003_v25  ;;  %838 = vmatprep.subr.bf16.mxu0 %v914_v26 }
  0xb1   :  { %v110_v34 = vsub.f32 %v94_v29, %v102_v18  ;;  %v144_v38 = vmul.f32 %v894_v35, %v120_v16  ;;  %v896_v39 = vpop.eup %895  ;;  %846 = vmatprep.subr.bf16.mxu1 %v914_v26  ;;  %842 = vmatprep.mubr.msk.bf16.mxu0 %vm915_vm0, %v914_v26 }
  0xb2   :  { %897 = vrsqrt.f32 %v127_v31  ;;  %v119_v36 = vmax.f32 %v111_v33, 0.0  ;;  %v145_v42 = vmul.f32 %v896_v39, %v121_v7  ;;  %v160_v63 = vsub.f32 %v148_v57, %v152_v56  ;;  %850 = vmatprep.mubr.msk.bf16.mxu1 %vm915_vm0, %v914_v26 }
  0xb3   :  { %v118_v37 = vmax.f32 %v110_v34, 0.0  ;;  %899 = vrsqrt.f32 %v126_v32  ;;  %190 = vperm.xlu1 %880, %v144_v38   ;;  %v156_v6 = vmul.f32 %v144_v38, %v1007_v27 }
  0xb4   :  { %v131_v40 = vadd.f32 0.001, %v119_v36  ;;  %v157_v8 = vmul.f32 %v145_v42, %v1009_v28  ;;  %v278_v28 = vld [vmem:[%s1140_s4] sm:$0xff] }
  0xb5   :  { %v130_v41 = vadd.f32 0.001, %v118_v37  ;;  %v164_v7 = vsub.f32 %v148_v57, %v156_v6 }
  0xb6   :  { %901 = vrsqrt.f32 %v131_v40 }
  0xb7   :  { %903 = vrsqrt.f32 %v130_v41  ;;  %195 = vperm.xlu1 %880, %v145_v42  }
  0xbc   :  { %v898_v45 = vpop.eup %897 }
  0xbd   :  { %v900_v46 = vpop.eup %899  ;;  %v143_v47 = vmul.f32 %v898_v45, %v123_v43 }
  0xbe   :  { %v142_v48 = vmul.f32 %v900_v46, %v122_v44 }
  0xbf   :  { %185 = vperm.xlu0 %879, %v143_v47   ;;  %v155_v52 = vmul.f32 %v143_v47, %v1019_v54  ;;  %v149_v54 = vld [vmem:[%s1139_s2 + $0x8] sm:$0xff] }
  0xc0   :  { %v902_v49 = vpop.eup %901  ;;  %180 = vperm.xlu1 %880, %v142_v48   ;;  %v161_v25 = vsub.f32 %v149_v54, %v153_v0  ;;  %v154_v9 = vmul.f32 %v142_v48, %v1021_v58 }
  0xc1   :  { %v904_v50 = vpop.eup %903  ;;  %v147_v51 = vmul.f32 %v902_v49, %v123_v43  ;;  %v163_v59 = vsub.f32 %v151_v55, %v155_v52  ;;  %v276_v52 = vld [vmem:[%s1141_s3] sm:$0xff] }
  0xc2   :  { %v146_v53 = vmul.f32 %v904_v50, %v122_v44  ;;  %v162_v13 = vsub.f32 %v150_v10, %v154_v9 }
  0xc3   :  { %205 = vperm.xlu0 %879, %v147_v51   ;;  %v159_v62 = vmul.f32 %v147_v51, %v1025_v60  ;;  %v165_v60 = vsub.f32 %v149_v54, %v157_v8 }
  0xc4   :  { %200 = vperm.xlu1 %880, %v146_v53   ;;  %v158_v27 = vmul.f32 %v146_v53, %v1027_v61 }
  0xc5   :  { %v167_v1 = vsub.f32 %v151_v55, %v159_v62  ;;  %v277_v55 = vpack.c.bf16 %v276_v52, %v276_v52  ;;  %v882_v62 = vld [vmem:[%s1142_s5 + $0x20] sm:$0xff]   ;;  %v888_v52 = vld [vmem:[%s1142_s5 + $0x38] sm:$0xff]  }
  0xc6   :  { %v166_v16 = vsub.f32 %v150_v10, %v158_v27 }
  0xc7   :  { %233 = vperm.xlu0 %879, %v163_v59  }
  0xc8   :  { %218 = vperm.xlu1 %880, %v160_v63  }
  0xcb   :  { %253 = vperm.xlu0 %879, %v167_v1  }
  0xcc   :  { %223 = vperm.xlu1 %880, %v161_v25  }
  0xd0   :  { %238 = vperm.xlu1 %880, %v164_v7  }
  0xd4   :  { %243 = vperm.xlu1 %880, %v165_v60  }
  0xd8   :  { %228 = vperm.xlu1 %880, %v162_v13  }
  0xdc   :  { %248 = vperm.xlu1 %880, %v166_v16  }
  0xe0   :  { %281 = vperm.xlu1 %880, %v278_v28  }
 0x12e   :  { %v176_v58 = vpop.permute.xlu1 %175 }
 0x12f   :  { %v171_v20 = vpop.permute.xlu0 %170  ;;  %v209_v24 = vmul.f32 %v965_v5, %v176_v58 }
 0x130   :  { %v208_v61 = vmul.f32 %v959_v3, %v171_v20 }
 0x132   :  { %v191_v17 = vpop.permute.xlu1 %190 }
 0x133   :  { %v212_v36 = vmul.f32 %v957_v2, %v191_v17 }
 0x136   :  { %v196_v18 = vpop.permute.xlu1 %195 }
 0x137   :  { %v213_v39 = vmul.f32 %v963_v4, %v196_v18 }
 0x13e   :  { %v186_v22 = vpop.permute.xlu0 %185 }
 0x13f   :  { %v181_v19 = vpop.permute.xlu1 %180  ;;  %v211_v40 = vmul.f32 %v980_v11, %v186_v22 }
 0x140   :  { %v210_v42 = vmul.f32 %v982_v12, %v181_v19 }
 0x142   :  { %v206_v30 = vpop.permute.xlu0 %205 }
 0x143   :  { %v201_v21 = vpop.permute.xlu1 %200  ;;  %v215_v43 = vmul.f32 %v989_v14, %v206_v30 }
 0x144   :  { %v214_v4 = vmul.f32 %v991_v15, %v201_v21  ;;  %v881_v15 = vld [vmem:[%s1142_s5] sm:$0xff]  }
 0x146   :  { %v234_v38 = vpop.permute.xlu0 %233 }
 0x147   :  { %v219_v23 = vpop.permute.xlu1 %218  ;;  %v259_v44 = vadd.f32 %v234_v38, %v211_v40 }
 0x148   :  { %v256_v29 = vadd.f32 %v219_v23, %v208_v61 }
 0x149   :  { %v267_v50 = vmax.f32 %v259_v44, 0.0 }
 0x14a   :  { %v264_v33 = vmax.f32 %v256_v29, 0.0  ;;  %v254_v47 = vpop.permute.xlu0 %253 }
 0x14b   :  { %v224_v31 = vpop.permute.xlu1 %223  ;;  %v263_v11 = vadd.f32 %v254_v47, %v215_v43 }
 0x14c   :  { %v257_v32 = vadd.f32 %v224_v31, %v209_v24 }
 0x14d   :  { %v271_v56 = vmax.f32 %v263_v11, 0.0  ;;  %v886_v11 = vld [vmem:[%s1142_s5 + $0x30] sm:$0xff]  }
 0x14e   :  { %v265_v34 = vmax.f32 %v257_v32, 0.0 }
 0x14f   :  { %v239_v35 = vpop.permute.xlu1 %238 }
 0x150   :  { %v272_v37 = vpack.c.bf16 %v265_v34, %v264_v33  ;;  %v260_v41 = vadd.f32 %v239_v35, %v212_v36 }
 0x152   :  { %839 = vmatpush3.bf16.msra.mxu0 %v272_v37  ;;  %v268_v45 = vmax.f32 %v260_v41, 0.0 }
 0x153   :  { %v244_v3 = vpop.permute.xlu1 %243  ;;  %840 = vmatprep.subr.bf16.mxu0 %v914_v26 }
 0x154   :  { %v261_v5 = vadd.f32 %v244_v3, %v213_v39 }
 0x156   :  { %v269_v46 = vmax.f32 %v261_v5, 0.0 }
 0x157   :  { %v229_v2 = vpop.permute.xlu1 %228 }
 0x158   :  { %v258_v48 = vadd.f32 %v229_v2, %v210_v42  ;;  %v274_v49 = vpack.c.bf16 %v269_v46, %v268_v45  ;;  %v883_v2 = vld [vmem:[%s1142_s5 + $0x8] sm:$0xff]  }
 0x15a   :  { %v266_v51 = vmax.f32 %v258_v48, 0.0  ;;  %847 = vmatpush3.bf16.msra.mxu1 %v274_v49  ;;  %v885_v48 = vld [vmem:[%s1142_s5 + $0x10] sm:$0xff]  }
 0x15b   :  { %v249_v12 = vpop.permute.xlu1 %248  ;;  %848 = vmatprep.subr.bf16.mxu1 %v914_v26 }
 0x15c   :  { %v273_v14 = vpack.c.bf16 %v267_v50, %v266_v51  ;;  %v262_v53 = vadd.f32 %v249_v12, %v214_v4  ;;  %v884_v50 = vld [vmem:[%s1142_s5 + $0x28] sm:$0xff]   ;;  %v887_v51 = vld [vmem:[%s1142_s5 + $0x18] sm:$0xff]  }
 0x15e   :  { %v270_v57 = vmax.f32 %v262_v53, 0.0  ;;  %841 = vmatpush3.bf16.msra.mxu0 %v273_v14 }
 0x15f   :  { %v282_v63 = vpop.permute.xlu1 %281 }
 0x160   :  { %v275_v59 = vpack.c.bf16 %v271_v56, %v270_v57 }
 0x161   :  { %843 = vmatmul.mubr.msk.bf16.vlgmr.msra.gmra.mrb[0].mxu0 %vm284_vm1, %v277_v55 }
 0x162   :  { %849 = vmatpush3.bf16.msra.mxu1 %v275_v59  ;;  %856 = vmatprep.mubr.msk.bf16.mxu0 %vm440_vm2, %v881_v15 }
 0x165   :  { %851 = vmatmul.mubr.msk.bf16.vlgmr.msra.gmra.mrb[0].mxu1 %vm284_vm1, %v277_v55 }
 0x166   :  { %866 = vmatprep.mubr.msk.bf16.mxu1 %vm440_vm2, %v882_v62 }
 0x234   :  { %v322_v0 = vpop.f32.mrb[0].mxu0 }
 0x235   :  { %v323_v54 = vadd.f32 %v322_v0, %v282_v63  ;;  %v844_v1 = vpop.f32.mrb[1].mxu0 }
 0x236   :  { %v325_v25 = vpop.f32.mrb[2].mxu0 }
 0x237   :  { %v368_v6 = vrot.slane %v323_v54, 4  ;;  %v845_v7 = vpop.f32.mrb[3].mxu0 }
 0x238   :  { %v362_v8 = vpop.f32.mrb[0].mxu1 }
 0x239   :  { %v369_v60 = vmax.f32 %v323_v54, %v368_v6  ;;  %v363_v9 = vadd.f32 %v362_v8, %v282_v63  ;;  %v852_v26 = vpop.f32.mrb[1].mxu1 }
 0x23a   :  { %v365_v10 = vpop.f32.mrb[2].mxu1 }
 0x23b   :  { %v370_v13 = vrot.slane %v369_v60, 2  ;;  %v374_v27 = vrot.slane %v363_v9, 4  ;;  %v853_v16 = vpop.f32.mrb[3].mxu1 }
 0x23d   :  { %v371_v28 = vmax.f32 %v369_v60, %v370_v13  ;;  %v375_v58 = vmax.f32 %v363_v9, %v374_v27 }
 0x23f   :  { %v372_v17 = vrot.slane %v371_v28, 1  ;;  %v376_v18 = vrot.slane %v375_v58, 2 }
 0x241   :  { %v373_v19 = vmax.f32 %v371_v28, %v372_v17  ;;  %v377_v20 = vmax.f32 %v375_v58, %v376_v18 }
 0x243   :  { %v380_v21 = vsub.f32 %v323_v54, %v373_v19  ;;  %v378_v22 = vrot.slane %v377_v20, 1 }
 0x245   :  { %v382_v23 = vmul.f32 1.442695, %v380_v21  ;;  %v379_v61 = vmax.f32 %v377_v20, %v378_v22 }
 0x247   :  { %905 = vpow2.f32 %v382_v23  ;;  %v381_v24 = vsub.f32 %v363_v9, %v379_v61 }
 0x249   :  { %v384_v29 = vmul.f32 1.442695, %v381_v24 }
 0x24b   :  { %907 = vpow2.f32 %v384_v29 }
 0x251   :  { %v906_v30 = vpop.eup %905 }
 0x252   :  { %v386_v31 = vrot.slane %v906_v30, 4 }
 0x254   :  { %v387_v32 = vadd.f32 %v906_v30, %v386_v31 }
 0x255   :  { %v908_v33 = vpop.eup %907 }
 0x256   :  { %v388_v34 = vrot.slane %v387_v32, 2  ;;  %v392_v35 = vrot.slane %v908_v33, 4 }
 0x258   :  { %v389_v36 = vadd.f32 %v388_v34, %v387_v32  ;;  %v393_v37 = vadd.f32 %v908_v33, %v392_v35 }
 0x25a   :  { %v390_v38 = vrot.slane %v389_v36, 1  ;;  %v394_v39 = vrot.slane %v393_v37, 2 }
 0x25c   :  { %v391_v40 = vadd.f32 %v390_v38, %v389_v36  ;;  %v395_v41 = vadd.f32 %v394_v39, %v393_v37 }
 0x25e   :  { %909 = vrcp.f32 %v391_v40  ;;  %v396_v3 = vrot.slane %v395_v41, 1 }
 0x260   :  { %v397_v5 = vadd.f32 %v396_v3, %v395_v41 }
 0x262   :  { %911 = vrcp.f32 %v397_v5 }
 0x268   :  { %v910_v42 = vpop.eup %909 }
 0x269   :  { %v400_v43 = vmul.f32 %v910_v42, %v906_v30 }
 0x26b   :  { %v418_v44 = vpack.c.bf16 %v400_v43, %v400_v43 }
 0x26c   :  { %v912_v45 = vpop.eup %911 }
 0x26d   :  { %874 = vmatprep.subr.msk.bf16.mxu0 %vm453_vm3, %v418_v44  ;;  %v455_v46 = vsel %vm453_vm3, %v418_v44, 0  ;;  %v401_v47 = vmul.f32 %v912_v45, %v908_v33 }
 0x26e   :  { %855 = vmatpush3.bf16.msra.mxu0 %v455_v46 }
 0x26f   :  { %v419_v49 = vpack.c.bf16 %v401_v47, %v401_v47 }
 0x271   :  { %875 = vmatprep.subr.msk.bf16.mxu1 %vm453_vm3, %v419_v49  ;;  %v555_v4 = vsel %vm453_vm3, %v419_v49, 0  ;;  %857 = vmatmul.mubr.msk.bf16.vlgmr.msra.gmra.mrb[4].mxu0 %vm440_vm2, %v883_v2 }
 0x272   :  { %865 = vmatpush3.bf16.msra.mxu1 %v555_v4  ;;  %860 = vmatprep.mubr.msk.bf16.mxu0 %vm440_vm2, %v885_v48 }
 0x275   :  { %867 = vmatmul.mubr.msk.bf16.vlgmr.msra.gmra.mrb[4].mxu1 %vm440_vm2, %v884_v50 }
 0x276   :  { %870 = vmatprep.mubr.msk.bf16.mxu1 %vm440_vm2, %v886_v11 }
 0x279   :  { %861 = vmatmul.mubr.msk.bf16.gmra.mrb[8].mxu0 %vm440_vm2, %v887_v51 }
 0x27d   :  { %871 = vmatmul.mubr.msk.bf16.gmra.mrb[8].mxu1 %vm440_vm2, %v888_v52 }
 0x344   :  { %v858_v12 = vpop.f32.mrb[4].mxu0 }
 0x345   :  { %v491_v14 = vpop.f32.mrb[5].mxu0 }
 0x346   :  { %v859_v53 = vpop.f32.mrb[6].mxu0 }
 0x347   :  { %v780_v55 = vpack.c.bf16 %v859_v53, %v858_v12  ;;  %v494_v56 = vpop.f32.mrb[7].mxu0 }
 0x348   :  { %v868_v57 = vpop.f32.mrb[4].mxu1  ;;  %v775_v59 = vpack.c.bf16 %v494_v56, %v491_v14 }
 0x349   :  { %v591_v15 = vpop.f32.mrb[5].mxu1  ;;  %815 = vst [vmem:[%s1143_s6 + $0x8] sm:$0xff] %v780_v55  }
 0x34a   :  { %v869_v62 = vpop.f32.mrb[6].mxu1  ;;  %776 = vst [vmem:[%s1143_s6] sm:$0xff] %v775_v59  }
 0x34b   :  { %v800_v63 = vpack.c.bf16 %v869_v62, %v868_v57  ;;  %v594_v0 = vpop.f32.mrb[7].mxu1 }
 0x34c   :  { %v795_v54 = vpack.c.bf16 %v594_v0, %v591_v15  ;;  %v862_v1 = vpop.f32.mrb[8].mxu0 }
 0x34d   :  { %819 = vst [vmem:[%s1143_s6 + $0x28] sm:$0xff] %v800_v63   ;;  %v507_v25 = vpop.f32.mrb[9].mxu0 }
 0x34e   :  { %818 = vst [vmem:[%s1143_s6 + $0x20] sm:$0xff] %v795_v54   ;;  %v863_v6 = vpop.f32.mrb[10].mxu0 }
 0x34f   :  { %v790_v7 = vpack.c.bf16 %v863_v6, %v862_v1  ;;  %v510_v8 = vpop.f32.mrb[11].mxu0 }
 0x350   :  { %v872_v60 = vpop.f32.mrb[8].mxu1  ;;  %v785_v9 = vpack.c.bf16 %v510_v8, %v507_v25 }
 0x351   :  { %v607_v26 = vpop.f32.mrb[9].mxu1  ;;  %817 = vst [vmem:[%s1143_s6 + $0x18] sm:$0xff] %v790_v7  }
 0x352   :  { %v873_v10 = vpop.f32.mrb[10].mxu1  ;;  %816 = vst [vmem:[%s1143_s6 + $0x10] sm:$0xff] %v785_v9  }
 0x353   :  { %v810_v13 = vpack.c.bf16 %v873_v10, %v872_v60  ;;  %v610_v27 = vpop.f32.mrb[11].mxu1 }
 0x354   :  { %v805_v16 = vpack.c.bf16 %v610_v27, %v607_v26 }
 0x355   :  { %821 = vst [vmem:[%s1143_s6 + $0x38] sm:$0xff] %v810_v13  }
 0x356   :  { %820 = vst [vmem:[%s1143_s6 + $0x30] sm:$0xff] %v805_v16  }

</bundles_post_ra>
